<compile_context>
chip_gen: v7x
topology: tpu7x:2x2x1
jax: 0.10.0
libtpu: 0.0.40
codegen_flags: <defaults>
</compile_context>

<pallas_src>
import jax
import jax.numpy as jnp
from jax.experimental import pallas as pl
from jax.experimental.pallas import tpu as pltpu

LANES = 128                 # vreg lane (minor) dimension
SUBLANES = 8                # f32 sublane tile
DEFAULT_BLOCK_ROWS = 2048   # 2048 x 128 x 4B = 1 MiB per f32 input block


def _round_up(a: int, b: int) -> int:
    return ((a + b - 1) // b) * b


def binary_hinge_loss(inputs: jax.Array, targets: jax.Array,
                      *, block_rows: int = DEFAULT_BLOCK_ROWS) -> jax.Array:
    """Pallas TPU implementation of torch.mean(torch.clamp(1 - inputs*targets, min=0))."""
    assert inputs.shape == targets.shape, "inputs/targets must have the same shape"
    n_elems = int(inputs.size)
    assert n_elems > 0

    x = inputs.reshape(-1)
    t = targets.reshape(-1)

    full_rows = n_elems // LANES      # fully-valid 128-lane rows
    rem = n_elems % LANES             # valid lanes in the single boundary row
    rows = full_rows + (1 if rem else 0)

    # Only the lane remainder (< 128 elems) is ever padded; pad values are
    # irrelevant because the tail is masked in-kernel. For the common case
    # (n_elems % 128 == 0) this is a pure reshape -- no HBM copy at all.
    if rem:
        x = jnp.pad(x, (0, LANES - rem))
        t = jnp.pad(t, (0, LANES - rem))

    x2 = x.reshape(rows, LANES)
    t2 = t.reshape(rows, LANES)

    # Block rows: as large as useful, multiple of 16 sublanes (legal for bf16 too).
    br = min(block_rows, _round_up(rows, 16))
    br = _round_up(br, 16)

    num_blocks = -(-rows // br)
    # 2-way outer split across TensorCores (v7x megacore); harmless elsewhere.
    num_splits = 2 if num_blocks >= 2 else 1
    blocks_per_split = -(-num_blocks // num_splits)

    # Static: is any masking needed (lane tail, partial last block, uneven split)?
    needs_mask = (rem != 0) or (num_splits * blocks_per_split * br != rows)

    def kernel(x_ref, t_ref, o_ref, acc_ref):
        s = pl.program_id(0)
        i = pl.program_id(1)

        @pl.when(i == 0)
        def _init():
            acc_ref[...] = jnp.zeros_like(acc_ref)

        xv = x_ref[...].astype(jnp.float32)
        tv = t_ref[...].astype(jnp.float32)
        v = jnp.maximum(1.0 - xv * tv, 0.0)

        if needs_mask:
            # Mask from the *logical* global flat index; correctness never
            # depends on the contents of padded / out-of-bounds block rows.
            row0 = (s * blocks_per_split + i) * br
            row_ids = row0 + jax.lax.broadcasted_iota(jnp.int32, (br, LANES), 0)
            if rem == 0:
                valid = row_ids < full_rows
            else:
                lane_ids = jax.lax.broadcasted_iota(jnp.int32, (br, LANES), 1)
                valid = (row_ids < full_rows) | (
                    (row_ids == full_rows) & (lane_ids < rem))
            v = jnp.where(valid, v, 0.0)

        # Pure elementwise VPU accumulate every step.
        acc_ref[...] += v

        @pl.when(i == pl.num_programs(1) - 1)
        def _finalize():
            total = jnp.sum(acc_ref[...])          # single cross-lane reduce
            o_ref[...] = jnp.full((SUBLANES, LANES), total, dtype=jnp.float32)

    def in_map(s, i):
        # Clamp so a block id from the (possibly uneven) split never addresses
        # past the array; such blocks are fully masked in-kernel anyway.
        return (jnp.minimum(s * blocks_per_split + i, num_blocks - 1), 0)

    out = pl.pallas_call(
        kernel,
        out_shape=jax.ShapeDtypeStruct((num_splits, SUBLANES, LANES), jnp.float32),
        grid_spec=pltpu.PrefetchScalarGridSpec(
            num_scalar_prefetch=0,
            grid=(num_splits, blocks_per_split),
            in_specs=[
                pl.BlockSpec((br, LANES), in_map),
                pl.BlockSpec((br, LANES), in_map),
            ],
            out_specs=pl.BlockSpec((None, SUBLANES, LANES), lambda s, i: (s, 0, 0)),
            scratch_shapes=[pltpu.VMEM((br, LANES), jnp.float32)],
        ),
        compiler_params=pltpu.CompilerParams(
            dimension_semantics=("parallel", "arbitrary"),
        ),
    )(x2, t2)

    total = jnp.sum(out[:, 0, 0])           # sum the per-split partials (tiny)
    mean = total / jnp.float32(n_elems)
    return mean.astype(inputs.dtype)


if __name__ == "__main__":
    key = jax.random.PRNGKey(0)
    k1, k2, k3, k4 = jax.random.split(key, 4)

    # Small NCHW-like logits + {-1,+1} targets (loss is layout-agnostic).
    shape = (2, 4, 16, 16)
    inputs = jax.random.normal(k1, shape, dtype=jnp.float32)
    targets = jnp.where(jax.random.bernoulli(k2, 0.5, shape), 1.0, -1.0).astype(jnp.float32)

    loss = binary_hinge_loss(inputs, targets)
    jax.block_until_ready(loss)
    ref = jnp.mean(jnp.maximum(1.0 - inputs * targets, 0.0))
    assert jnp.allclose(loss, ref, rtol=1e-5, atol=1e-6), (loss, ref)

    # Ragged size: exercises the in-kernel tail mask (no full-array padding).
    shape2 = (3, 5, 7)
    inputs2 = jax.random.normal(k3, shape2, dtype=jnp.float32)
    targets2 = jnp.where(jax.random.bernoulli(k4, 0.5, shape2), 1.0, -1.0).astype(jnp.float32)
    loss2 = binary_hinge_loss(inputs2, targets2)
    jax.block_until_ready(loss2)
    ref2 = jnp.mean(jnp.maximum(1.0 - inputs2 * targets2, 0.0))
    assert jnp.allclose(loss2, ref2, rtol=1e-5, atol=1e-6), (loss2, ref2)

    print("KERNEL_OK")
</pallas_src>

<mosaic_0001>
module attributes {stable_mosaic.version = 11 : i64} {
  func.func @kernel(%arg0: i32, %arg1: i32, %arg2: memref<16x128xf32, #tpu.memory_space<vmem>>, %arg3: memref<16x128xf32, #tpu.memory_space<vmem>>, %arg4: memref<1x8x128xf32, #tpu.memory_space<vmem>>, %arg5: memref<16x128xf32, #tpu.memory_space<vmem>>) attributes {dimension_semantics = [#tpu.dimension_semantics<parallel>, #tpu.dimension_semantics<arbitrary>], iteration_bounds = array<i64: 1, 1>, scalar_prefetch = 0 : i64, scratch_operands = 1 : i64, tpu.core_type = #tpu.core_type<tc>, window_params = [{transform_indices = @transform_0, window_bounds = array<i64: 16, 128>}, {transform_indices = @transform_1, window_bounds = array<i64: 16, 128>}, {transform_indices = @transform_2, window_bounds = array<i64: 1, 8, 128>}]} {
    %c0_i32 = arith.constant 0 : i32
    %0 = arith.cmpi eq, %arg1, %c0_i32 : i32
    %1 = arith.extui %0 : i1 to i32
    %c0_i32_0 = arith.constant 0 : i32
    %2 = arith.cmpi ne, %1, %c0_i32_0 : i32
    scf.if %2 {
      %cst_11 = arith.constant 0.000000e+00 : f32
      %16 = vector.broadcast %cst_11 : f32 to vector<16x128xf32>
      %c0_12 = arith.constant 0 : index
      %c0_13 = arith.constant 0 : index
      %17 = vector.load %arg5[%c0_12, %c0_13] : memref<16x128xf32, #tpu.memory_space<vmem>>, vector<16x128xf32>
      tpu.vector_store %arg5[%c0_12, %c0_13], %16 {strides = array<i32>} : memref<16x128xf32, #tpu.memory_space<vmem>>, vector<16x128xf32>,
    } else {
    }
    %c0 = arith.constant 0 : index
    %c0_1 = arith.constant 0 : index
    %3 = vector.load %arg2[%c0, %c0_1] : memref<16x128xf32, #tpu.memory_space<vmem>>, vector<16x128xf32>
    %c0_2 = arith.constant 0 : index
    %c0_3 = arith.constant 0 : index
    %4 = vector.load %arg3[%c0_2, %c0_3] : memref<16x128xf32, #tpu.memory_space<vmem>>, vector<16x128xf32>
    %5 = arith.mulf %3, %4 : vector<16x128xf32>
    %cst = arith.constant 1.000000e+00 : f32
    %6 = vector.broadcast %cst : f32 to vector<16x128xf32>
    %7 = arith.subf %6, %5 : vector<16x128xf32>
    %cst_4 = arith.constant 0.000000e+00 : f32
    %8 = vector.broadcast %cst_4 : f32 to vector<16x128xf32>
    %9 = arith.maximumf %7, %8 : vector<16x128xf32>
    %c0_5 = arith.constant 0 : index
    %c0_6 = arith.constant 0 : index
    %10 = vector.load %arg5[%c0_5, %c0_6] : memref<16x128xf32, #tpu.memory_space<vmem>>, vector<16x128xf32>
    %11 = arith.addf %10, %9 : vector<16x128xf32>
    %c0_7 = arith.constant 0 : index
    %c0_8 = arith.constant 0 : index
    %12 = vector.load %arg5[%c0_7, %c0_8] : memref<16x128xf32, #tpu.memory_space<vmem>>, vector<16x128xf32>
    tpu.vector_store %arg5[%c0_7, %c0_8], %11 {strides = array<i32>} : memref<16x128xf32, #tpu.memory_space<vmem>>, vector<16x128xf32>,
    %c0_i32_9 = arith.constant 0 : i32
    %13 = arith.cmpi eq, %arg1, %c0_i32_9 : i32
    %14 = arith.extui %13 : i1 to i32
    %c0_i32_10 = arith.constant 0 : i32
    %15 = arith.cmpi ne, %14, %c0_i32_10 : i32
    scf.if %15 {
      %c0_11 = arith.constant 0 : index
      %c0_12 = arith.constant 0 : index
      %16 = vector.load %arg5[%c0_11, %c0_12] : memref<16x128xf32, #tpu.memory_space<vmem>>, vector<16x128xf32>
      %17 = vector.shape_cast %16 : vector<16x128xf32> to vector<1x16x128xf32>
      %cst_13 = arith.constant dense<0.000000e+00> : vector<1xf32>
      %18 = vector.multi_reduction <add>, %17, %cst_13 [1, 2] : vector<1x16x128xf32> to vector<1xf32>
      %19 = vector.shape_cast %18 : vector<1xf32> to vector<1x1x1xf32>
      %20 = vector.extract %19[0, 0, 0] : f32 from vector<1x1x1xf32>
      %21 = vector.broadcast %20 : f32 to vector<8x128xf32>
      %c0_14 = arith.constant 0 : index
      %c0_15 = arith.constant 0 : index
      %c0_16 = arith.constant 0 : index
      %22 = vector.load %arg4[%c0_14, %c0_15, %c0_16] : memref<1x8x128xf32, #tpu.memory_space<vmem>>, vector<1x8x128xf32>
      %23 = vector.shape_cast %22 : vector<1x8x128xf32> to vector<8x128xf32>
      %24 = vector.shape_cast %21 : vector<8x128xf32> to vector<1x8x128xf32>
      tpu.vector_store %arg4[%c0_14, %c0_15, %c0_16], %24 {strides = array<i32>} : memref<1x8x128xf32, #tpu.memory_space<vmem>>, vector<1x8x128xf32>,
    } else {
    }
    return
  }
  func.func @transform_0(%arg0: i32, %arg1: i32) -> (i32, i32) {
    %c1_i32 = arith.constant 1 : i32
    %0 = arith.muli %arg0, %c1_i32 : i32
    %1 = arith.addi %0, %arg1 : i32
    %c0_i32 = arith.constant 0 : i32
    %2 = arith.minsi %1, %c0_i32 : i32
    %c0_i32_0 = arith.constant 0 : i32
    %c0_i32_1 = arith.constant 0 : i32
    return %2, %c0_i32_0 : i32, i32
  }
  func.func @transform_1(%arg0: i32, %arg1: i32) -> (i32, i32) {
    %c1_i32 = arith.constant 1 : i32
    %0 = arith.muli %arg0, %c1_i32 : i32
    %1 = arith.addi %0, %arg1 : i32
    %c0_i32 = arith.constant 0 : i32
    %2 = arith.minsi %1, %c0_i32 : i32
    %c0_i32_0 = arith.constant 0 : i32
    %c0_i32_1 = arith.constant 0 : i32
    return %2, %c0_i32_0 : i32, i32
  }
  func.func @transform_2(%arg0: i32, %arg1: i32) -> (i32, i32, i32) {
    %c0_i32 = arith.constant 0 : i32
    %c0_i32_0 = arith.constant 0 : i32
    %c0_i32_1 = arith.constant 0 : i32
    return %arg0, %c0_i32, %c0_i32_0 : i32, i32, i32
  }
}

</mosaic_0001>

<bundles_post_ra>
// kernel: tpu_custom_call.1
= control target key start
LH: loop header
LB: loop body
LE: loop exit
PB: predicated region body
PF: predicated region fallthrough
CT: control target
= control target key end

     0   :  { %7 = vsyncpa [#allocation4], 0  ;;  %s254_s0 = inlined_call_operand.hbm [shape: f32[16,128], index: 0, kind: input, shape index: {}]   ;;  %s255_s1 = inlined_call_operand.hbm [shape: f32[16,128], index: 1, kind: input, shape index: {}]   ;;  %s256_s2 = inlined_call_operand.hbm [shape: f32[1,8,128], index: 2, kind: output, shape index: {}]  }
   0x1   :  { %8 = vsyncpa [#allocation7], 0 }
   0x2   :  { %9 = vsyncpa [#allocation5], 0  ;;  %s198_s9 = smov [#allocation3]   ;;  %s126_s13 = scalar_lea.hbm %s254_s0, 256 }
   0x3   :  { %s21_s10 = sshll.u32 %s198_s9, 4  ;;  %p127_p0 = scmp.ne.s32.totalorder %s254_s0, %s126_s13  ;;  %s22_s10 = int_to_ptr.vmem [resolvable:$true] %s21_s10 }
   0x4   :  { %p130_p1 = scmp.lt.u32.totalorder %s126_s13, %s254_s0 }
   0x6   :  { %p132_p2 = pnand %p130_p1, %p127_p0 }
   0x8   :  { %135 = shalt.err (!%p132_p2)
}
   0x9   :  { %s136_s18 = scalar_lea.vmem %s22_s10, 256  ;;  %p141_p4 = scmp.lt.s32.totalorder %s22_s10, %s22_s10 }
   0xa   :  { %p137_p3 = scmp.ne.s32.totalorder %s22_s10, %s136_s18  ;;  %p142_p5 = scmp.lt.s32.totalorder %s136_s18, %s136_s18 }
   0xc   :  { %p143_p6 = por %p142_p5, %p141_p4 }
   0xe   :  { %p144_p7 = pnand %p143_p6, %p137_p3 }
  0x10   :  { %147 = shalt.err (!%p144_p7)
}
  0x11   :  { %s199_s19 = smov 128   ;;  %s200_s20 = smov 8  }
  0x12   :  { %27 = dma.hbm_to_vmem [thread:$0]  %s254_s0, 256, %s22_s10, [#allocation4], %s199_s19, %s199_s19, %s200_s20  }
  0x13   :  { %s201_s23 = smov [#allocation6]   ;;  %s148_s27 = scalar_lea.hbm %s255_s1, 256 }
  0x14   :  { %s39_s24 = sshll.u32 %s201_s23, 4  ;;  %p149_p8 = scmp.ne.s32.totalorder %s255_s1, %s148_s27  ;;  %s40_s24 = int_to_ptr.vmem [resolvable:$true] %s39_s24 }
  0x15   :  { %p152_p9 = scmp.lt.u32.totalorder %s148_s27, %s255_s1 }
  0x17   :  { %p154_p10 = pnand %p152_p9, %p149_p8 }
  0x19   :  { %157 = shalt.err (!%p154_p10)
}
  0x1a   :  { %s158_s4 = scalar_lea.vmem %s40_s24, 256  ;;  %p163_p12 = scmp.lt.s32.totalorder %s40_s24, %s40_s24 }
  0x1b   :  { %p159_p11 = scmp.ne.s32.totalorder %s40_s24, %s158_s4  ;;  %p164_p13 = scmp.lt.s32.totalorder %s158_s4, %s158_s4 }
  0x1d   :  { %p165_p0 = por %p164_p13, %p163_p12 }
  0x1f   :  { %p166_p1 = pnand %p165_p0, %p159_p11 }
  0x21   :  { %169 = shalt.err (!%p166_p1)
}
  0x22   :  { %45 = dma.hbm_to_vmem [thread:$0]  %s255_s1, 256, %s40_s24, [#allocation7], %s199_s19, %s199_s19, %s200_s20  }
  0x23   :  { %192 = dma.done.wait [#allocation4], 256  }
  0x24   :  { %193 = vsyncadd [#allocation4], 4294967040 }
  0x25   :  { %194 = dma.done.wait [#allocation7], 256  }
  0x26   :  { %195 = vsyncadd [#allocation7], 4294967040  ;;  %v66_v0 = vld [vmem:[#allocation3] sm:$0xff]  ;;  %v67_v1 = vld [vmem:[#allocation3 + $0x8] sm:$0xff]  ;;  %s202_s1 = smov [#allocation8]  }
  0x27   :  { %v68_v2 = vld [vmem:[#allocation6] sm:$0xff]  ;;  %v69_v3 = vld [vmem:[#allocation6 + $0x8] sm:$0xff]  ;;  %s105_s6 = sshll.u32 %s202_s1, 4  ;;  %s106_s6 = int_to_ptr.vmem [resolvable:$true] %s105_s6 }
  0x28   :  { %v70_v4 = vmul.f32 %v68_v2, %v66_v0  ;;  %v71_v5 = vmul.f32 %v69_v3, %v67_v1  ;;  %s170_s8 = scalar_lea.vmem %s106_s6, 128  ;;  %p175_p3 = scmp.lt.s32.totalorder %s106_s6, %s106_s6 }
  0x29   :  { %p171_p2 = scmp.ne.s32.totalorder %s106_s6, %s170_s8  ;;  %p176_p4 = scmp.lt.s32.totalorder %s170_s8, %s170_s8 }
  0x2a   :  { %v72_v6 = vsub.f32 1.0, %v70_v4  ;;  %v73_v7 = vsub.f32 1.0, %v71_v5 }
  0x2b   :  { %p177_p5 = por %p176_p4, %p175_p3 }
  0x2c   :  { %v74_v8 = vmax.f32 %v72_v6, 0.0  ;;  %v75_v9 = vmax.f32 %v73_v7, 0.0 }
  0x2d   :  { %p178_p6 = pnand %p177_p5, %p171_p2 }
  0x2e   :  { %v87_v10 = vadd.f32 %v75_v9, %v74_v8 }
  0x30   :  { %88 = vadd.xlane.f32.xlu0 %v87_v10 }
  0xbd   :  { %v89_v11 = vpop.xlane.xlu0 %88 }
  0xbe   :  { %v90_v12 = vrot.slane %v89_v11, 4 }
  0xc0   :  { %v91_v13 = vadd.f32 %v90_v12, %v89_v11 }
  0xc2   :  { %v92_v14 = vrot.slane %v91_v13, 2 }
  0xc4   :  { %v93_v15 = vadd.f32 %v92_v14, %v91_v13 }
  0xc6   :  { %v94_v16 = vrot.slane %v93_v15, 1 }
  0xc8   :  { %v95_v17 = vadd.f32 %v94_v16, %v93_v15 }
  0xca   :  { %119 = vpush %v95_v17 }
  0xfb   :  { %s120_s7 = spop %119 }
  0xfc   :  { %v97_v18 = vstv %s120_s7 }
  0xfd   :  { %98 = vst [vmem:[#allocation8] sm:$0xff] %v97_v18 }
  0xfe   :  { %181 = shalt.err (!%p178_p6)
}
  0xff   :  { %s182_s11 = scalar_lea.hbm %s256_s2, 128 }
 0x100   :  { %p183_p7 = scmp.ne.s32.totalorder %s256_s2, %s182_s11  ;;  %p186_p8 = scmp.lt.u32.totalorder %s182_s11, %s256_s2 }
 0x102   :  { %p188_p9 = pnand %p186_p8, %p183_p7 }
 0x104   :  { %191 = shalt.err (!%p188_p9)
}
 0x105   :  { %108 = dma.vmem_to_hbm [thread:$0]  %s106_s6, 128, %s256_s2, [#allocation5]  }
 0x106   :  { %196 = dma.done.wait [#allocation5], 128  }
 0x107   :  { %197 = vsyncadd [#allocation5], 4294967168 }
 0x108   :  { %112 = vsyncpa [#allocation4], 1 }
 0x109   :  { %113 = vsyncpa [#allocation7], 1 }
 0x10a   :  { %114 = vsyncpa [#allocation5], 1 }

</bundles_post_ra>
